<compile_context>
chip_gen: v7x
topology: tpu7x:2x2x1
jax: 0.10.0
libtpu: 0.0.40
codegen_flags: <defaults>
</compile_context>

<pallas_src>
import functools

import jax
import jax.numpy as jnp
from jax.experimental import pallas as pl
from jax.experimental.pallas import tpu as pltpu


def _bert_self_output_kernel(x_ref, res_ref, w_ref, b_ref, g_ref, beta_ref,
                             o_ref, *, eps, inv_h, compute_dtype):
    # Cast the activation tile in VMEM (VPU, hidden under the DMA) instead of
    # paying an extra HBM pass in the wrapper.
    x = x_ref[...]
    if x.dtype != compute_dtype:
        x = x.astype(compute_dtype)

    # Dense: x @ W (W already [in, out]); f32 accumulation on the MXU.
    h = jax.lax.dot_general(
        x, w_ref[...],
        dimension_numbers=(((1,), (0,)), ((), ())),
        preferred_element_type=jnp.float32)
    h = h + b_ref[...].astype(jnp.float32)          # bias broadcast over rows

    # Dropout: identity at inference time.

    # Residual add (f32).
    h = h + res_ref[...].astype(jnp.float32)

    # LayerNorm over the hidden (last) axis: scaled-sum reductions,
    # centered-variance form, rsqrt on the EUP.
    mean = jnp.sum(h, axis=-1, keepdims=True) * inv_h
    centered = h - mean
    var = jnp.sum(centered * centered, axis=-1, keepdims=True) * inv_h
    y = centered * jax.lax.rsqrt(var + eps)
    y = y * g_ref[...].astype(jnp.float32) + beta_ref[...].astype(jnp.float32)

    o_ref[...] = y.astype(o_ref.dtype)


def _round_up(x, m):
    return ((x + m - 1) // m) * m


def _vmem_capacity_bytes():
    try:
        info = pltpu.get_tpu_info()
        cap = getattr(info, "vmem_capacity_bytes", None)
        if cap:
            return int(cap)
    except Exception:
        pass
    return 64 << 20   # conservative: v7x per-TensorCore VMEM


def _choose_tile(tokens, sub, tile_rows):
    # Big tiles amortize the ~0.35us/grid-step overhead; bump further for
    # very large token counts.
    target = tile_rows if tokens < 8192 else max(tile_rows, 1024)
    tile = max(sub, min(_round_up(target, sub), _round_up(tokens, sub)))
    # Prefer >=4 grid steps (2 per TensorCore on v7x megacore) as long as the
    # tile stays >=128 rows; otherwise settle for >=2 steps for pipelining.
    steps = pl.cdiv(tokens, tile)
    if steps < 4:
        cand4 = _round_up(pl.cdiv(tokens, 4), sub)
        if cand4 >= 128:
            tile = cand4
        elif steps < 2 and tokens > sub:
            tile = _round_up(pl.cdiv(tokens, 2), sub)
    return tile


def bert_self_output(hidden_states, input_tensor, weight, bias, gamma, beta,
                     *, eps=1e-12, tile_rows=512,
                     compute_dtype=jnp.bfloat16, out_dtype=None):
    """hidden_states, input_tensor: [B, S, H]; weight: [H, H] in PyTorch
    (out, in) layout; bias/gamma/beta: [H].

    compute_dtype: dtype for the matmul operands (default bf16); accumulation
    and LayerNorm always stay in f32.  Pass None to keep the input dtype.
    out_dtype: optional output dtype (default: input dtype).
    """
    B, S, H = hidden_states.shape
    tokens = B * S
    out_dtype = hidden_states.dtype if out_dtype is None else out_dtype
    compute_dtype = jnp.dtype(hidden_states.dtype if compute_dtype is None
                              else compute_dtype)

    x2d = hidden_states.reshape(tokens, H)          # kept in HBM dtype; cast in-kernel
    r2d = input_tensor.reshape(tokens, H)
    # One-time transpose (+ cast) of the weight to [in, out]; fused into a
    # single XLA op.  Plain (1,)x(0,) contraction in the kernel.
    w = weight.T.astype(compute_dtype)

    b2d = bias.reshape(1, H).astype(jnp.float32)
    g2d = gamma.reshape(1, H).astype(jnp.float32)
    beta2d = beta.reshape(1, H).astype(jnp.float32)

    # Sublane packing of the HBM activation dtype: 8 rows/vreg f32, 16 bf16.
    x_bytes = jnp.dtype(x2d.dtype).itemsize
    sub = 8 * max(1, 4 // x_bytes)
    tile = _choose_tile(tokens, sub, tile_rows)

    # Ragged tail: no HBM padding copies — the grid is cdiv(tokens, tile) and
    # Pallas masks the partial boundary block (OOB rows are never written).
    grid = (pl.cdiv(tokens, tile),)

    row_spec = pl.BlockSpec((tile, H), lambda i: (i, 0))
    # Constant index_map -> the weight is DMA'd into VMEM once and reused
    # across all grid steps.
    w_spec = pl.BlockSpec((H, H), lambda i: (0, 0))
    vec_spec = pl.BlockSpec((1, H), lambda i: (0, 0))

    # Generation-aware VMEM budget: double-buffered activation tiles,
    # resident weight, f32 compute intermediates, clamped to 75% of the
    # chip's reported per-core VMEM (64 MiB on v7x, 128 MiB on v5e/v6e).
    r_bytes = jnp.dtype(r2d.dtype).itemsize
    w_bytes = jnp.dtype(w.dtype).itemsize
    o_bytes = jnp.dtype(out_dtype).itemsize
    need = (2 * tile * H * (x_bytes + r_bytes + o_bytes)   # pipelined tiles
            + 2 * H * H * w_bytes                          # resident weight
            + 4 * tile * H * 4                             # f32 intermediates
            + 8 * H * 4)                                   # bias/gamma/beta
    vmem_cap = _vmem_capacity_bytes()
    vmem_limit = int(min(max(need * 3 // 2 + (4 << 20), 32 << 20),
                         (vmem_cap * 3) // 4))

    out = pl.pallas_call(
        functools.partial(_bert_self_output_kernel, eps=eps, inv_h=1.0 / H,
                          compute_dtype=compute_dtype),
        out_shape=jax.ShapeDtypeStruct((tokens, H), out_dtype),
        grid_spec=pltpu.PrefetchScalarGridSpec(
            num_scalar_prefetch=0,
            grid=grid,
            in_specs=[row_spec,   # x tile
                      row_spec,   # residual tile
                      w_spec,     # weight (whole matrix, resident)
                      vec_spec,   # bias
                      vec_spec,   # LN gamma
                      vec_spec],  # LN beta
            out_specs=row_spec,
        ),
        compiler_params=pltpu.CompilerParams(
            dimension_semantics=("parallel",),
            vmem_limit_bytes=vmem_limit),
    )(x2d, r2d, w, b2d, g2d, beta2d)

    return out.reshape(B, S, H)


def _reference(hidden_states, input_tensor, weight, bias, gamma, beta, eps):
    h = jnp.einsum("bsh,oh->bso", hidden_states, weight) + bias
    h = h + input_tensor
    mean = jnp.mean(h, axis=-1, keepdims=True)
    var = jnp.mean((h - mean) ** 2, axis=-1, keepdims=True)
    return (h - mean) * jax.lax.rsqrt(var + eps) * gamma + beta


if __name__ == "__main__":
    B, S, H = 2, 8, 128
    eps = 1e-12

    key = jax.random.PRNGKey(0)
    k1, k2, k3, k4 = jax.random.split(key, 4)

    hidden_states = jax.random.normal(k1, (B, S, H), dtype=jnp.float32)
    input_tensor = jax.random.normal(k2, (B, S, H), dtype=jnp.float32)
    # nn.Linear(H, H): weight [out, in], bias [out]
    weight = jax.random.normal(k3, (H, H), dtype=jnp.float32) * 0.02
    bias = jax.random.normal(k4, (H,), dtype=jnp.float32) * 0.02
    # nn.LayerNorm defaults: gamma=1, beta=0
    gamma = jnp.ones((H,), dtype=jnp.float32)
    beta = jnp.zeros((H,), dtype=jnp.float32)

    ref = _reference(hidden_states, input_tensor, weight, bias, gamma, beta, eps)

    # 1) f32 operand path (tight tolerance).
    out = bert_self_output(hidden_states, input_tensor, weight, bias,
                           gamma, beta, eps=eps, compute_dtype=None)
    out = jax.block_until_ready(out)
    assert out.shape == (B, S, H)
    assert jnp.allclose(out, ref, atol=2e-4, rtol=2e-4), "f32 mismatch vs reference"

    # 2) Default path: bf16 matmul operands (f32 accumulation / LayerNorm).
    out_bf16 = bert_self_output(hidden_states, input_tensor, weight, bias,
                                gamma, beta, eps=eps)
    out_bf16 = jax.block_until_ready(out_bf16)
    assert out_bf16.dtype == jnp.float32
    assert jnp.allclose(out_bf16, ref, atol=1e-1, rtol=1e-1), "bf16 mismatch vs reference"

    # 3) Ragged token count (partial boundary block, no HBM padding): B=1, S=5.
    hs_r = hidden_states[:1, :5]
    it_r = input_tensor[:1, :5]
    out_r = bert_self_output(hs_r, it_r, weight, bias, gamma, beta, eps=eps,
                             compute_dtype=None)
    out_r = jax.block_until_ready(out_r)
    ref_r = _reference(hs_r, it_r, weight, bias, gamma, beta, eps)
    assert out_r.shape == (1, 5, H)
    assert jnp.allclose(out_r, ref_r, atol=2e-4, rtol=2e-4), "ragged mismatch vs reference"

    # 4) bf16 output dtype (halves the output stream for willing consumers).
    out_b = bert_self_output(hidden_states, input_tensor, weight, bias,
                             gamma, beta, eps=eps, out_dtype=jnp.bfloat16)
    out_b = jax.block_until_ready(out_b)
    assert out_b.dtype == jnp.bfloat16
    assert jnp.allclose(out_b.astype(jnp.float32), ref, atol=2e-1, rtol=2e-1), \
        "bf16-output mismatch vs reference"

    print("KERNEL_OK")
</pallas_src>

<mosaic_0001>
module attributes {stable_mosaic.version = 11 : i64} {
  func.func @_bert_self_output_kernel(%arg0: i32, %arg1: memref<8x128xf32, #tpu.memory_space<vmem>>, %arg2: memref<8x128xf32, #tpu.memory_space<vmem>>, %arg3: memref<128x128xf32, #tpu.memory_space<vmem>>, %arg4: memref<1x128xf32, #tpu.memory_space<vmem>>, %arg5: memref<1x128xf32, #tpu.memory_space<vmem>>, %arg6: memref<1x128xf32, #tpu.memory_space<vmem>>, %arg7: memref<8x128xf32, #tpu.memory_space<vmem>>) attributes {dimension_semantics = [#tpu.dimension_semantics<parallel>], iteration_bounds = array<i64: 2>, scalar_prefetch = 0 : i64, scratch_operands = 0 : i64, tpu.core_type = #tpu.core_type<tc>, window_params = [{transform_indices = @transform_0, window_bounds = array<i64: 8, 128>}, {transform_indices = @transform_1, window_bounds = array<i64: 8, 128>}, {pipeline_mode = #tpu.pipeline_mode<synchronous>, transform_indices = @transform_2, window_bounds = array<i64: 128, 128>}, {pipeline_mode = #tpu.pipeline_mode<synchronous>, transform_indices = @transform_3, window_bounds = array<i64: 1, 128>}, {pipeline_mode = #tpu.pipeline_mode<synchronous>, transform_indices = @transform_4, window_bounds = array<i64: 1, 128>}, {pipeline_mode = #tpu.pipeline_mode<synchronous>, transform_indices = @transform_5, window_bounds = array<i64: 1, 128>}, {transform_indices = @transform_6, window_bounds = array<i64: 8, 128>}]} {
    %c0 = arith.constant 0 : index
    %c0_0 = arith.constant 0 : index
    %0 = vector.load %arg1[%c0, %c0_0] : memref<8x128xf32, #tpu.memory_space<vmem>>, vector<8x128xf32>
    %c0_1 = arith.constant 0 : index
    %c0_2 = arith.constant 0 : index
    %1 = vector.load %arg3[%c0_1, %c0_2] : memref<128x128xf32, #tpu.memory_space<vmem>>, vector<128x128xf32>
    %cst = arith.constant dense<0.000000e+00> : vector<8x128xf32>
    %2 = tpu.matmul %0, %1, %cst {dimension_numbers = #tpu.dot_dimension_numbers<[1], [0], [0], [1], [0, 0, 1, 1], [], []>} : vector<8x128xf32>, vector<128x128xf32>, vector<8x128xf32> -> vector<8x128xf32>
    %c0_3 = arith.constant 0 : index
    %c0_4 = arith.constant 0 : index
    %3 = vector.load %arg4[%c0_3, %c0_4] : memref<1x128xf32, #tpu.memory_space<vmem>>, vector<1x128xf32>
    %4 = vector.broadcast %3 : vector<1x128xf32> to vector<8x128xf32>
    %5 = arith.addf %2, %4 : vector<8x128xf32>
    %c0_5 = arith.constant 0 : index
    %c0_6 = arith.constant 0 : index
    %6 = vector.load %arg2[%c0_5, %c0_6] : memref<8x128xf32, #tpu.memory_space<vmem>>, vector<8x128xf32>
    %7 = arith.addf %5, %6 : vector<8x128xf32>
    %cst_7 = arith.constant dense<0.000000e+00> : vector<8xf32>
    %8 = vector.multi_reduction <add>, %7, %cst_7 [1] : vector<8x128xf32> to vector<8xf32>
    %9 = vector.shape_cast %8 : vector<8xf32> to vector<8x1xf32>
    %cst_8 = arith.constant 7.812500e-03 : f32
    %10 = vector.broadcast %cst_8 : f32 to vector<8x1xf32>
    %11 = arith.mulf %9, %10 : vector<8x1xf32>
    %12 = vector.broadcast %11 : vector<8x1xf32> to vector<8x128xf32>
    %13 = arith.subf %7, %12 : vector<8x128xf32>
    %14 = arith.mulf %13, %13 : vector<8x128xf32>
    %cst_9 = arith.constant dense<0.000000e+00> : vector<8xf32>
    %15 = vector.multi_reduction <add>, %14, %cst_9 [1] : vector<8x128xf32> to vector<8xf32>
    %16 = vector.shape_cast %15 : vector<8xf32> to vector<8x1xf32>
    %cst_10 = arith.constant 7.812500e-03 : f32
    %17 = vector.broadcast %cst_10 : f32 to vector<8x1xf32>
    %18 = arith.mulf %16, %17 : vector<8x1xf32>
    %cst_11 = arith.constant 9.99999996E-13 : f32
    %19 = vector.broadcast %cst_11 : f32 to vector<8x1xf32>
    %20 = arith.addf %18, %19 : vector<8x1xf32>
    %21 = math.rsqrt %20 : vector<8x1xf32>
    %22 = vector.broadcast %21 : vector<8x1xf32> to vector<8x128xf32>
    %23 = arith.mulf %13, %22 : vector<8x128xf32>
    %c0_12 = arith.constant 0 : index
    %c0_13 = arith.constant 0 : index
    %24 = vector.load %arg5[%c0_12, %c0_13] : memref<1x128xf32, #tpu.memory_space<vmem>>, vector<1x128xf32>
    %25 = vector.broadcast %24 : vector<1x128xf32> to vector<8x128xf32>
    %26 = arith.mulf %23, %25 : vector<8x128xf32>
    %c0_14 = arith.constant 0 : index
    %c0_15 = arith.constant 0 : index
    %27 = vector.load %arg6[%c0_14, %c0_15] : memref<1x128xf32, #tpu.memory_space<vmem>>, vector<1x128xf32>
    %28 = vector.broadcast %27 : vector<1x128xf32> to vector<8x128xf32>
    %29 = arith.addf %26, %28 : vector<8x128xf32>
    %c0_16 = arith.constant 0 : index
    %c0_17 = arith.constant 0 : index
    %30 = vector.load %arg7[%c0_16, %c0_17] : memref<8x128xf32, #tpu.memory_space<vmem>>, vector<8x128xf32>
    tpu.vector_store %arg7[%c0_16, %c0_17], %29 {strides = array<i32>} : memref<8x128xf32, #tpu.memory_space<vmem>>, vector<8x128xf32>,
    return
  }
  func.func @transform_0(%arg0: i32) -> (i32, i32) {
    %c0_i32 = arith.constant 0 : i32
    %c0_i32_0 = arith.constant 0 : i32
    return %arg0, %c0_i32 : i32, i32
  }
  func.func @transform_1(%arg0: i32) -> (i32, i32) {
    %c0_i32 = arith.constant 0 : i32
    %c0_i32_0 = arith.constant 0 : i32
    return %arg0, %c0_i32 : i32, i32
  }
  func.func @transform_2(%arg0: i32) -> (i32, i32) {
    %c0_i32 = arith.constant 0 : i32
    %c0_i32_0 = arith.constant 0 : i32
    %c0_i32_1 = arith.constant 0 : i32
    return %c0_i32, %c0_i32_0 : i32, i32
  }
  func.func @transform_3(%arg0: i32) -> (i32, i32) {
    %c0_i32 = arith.constant 0 : i32
    %c0_i32_0 = arith.constant 0 : i32
    %c0_i32_1 = arith.constant 0 : i32
    return %c0_i32, %c0_i32_0 : i32, i32
  }
  func.func @transform_4(%arg0: i32) -> (i32, i32) {
    %c0_i32 = arith.constant 0 : i32
    %c0_i32_0 = arith.constant 0 : i32
    %c0_i32_1 = arith.constant 0 : i32
    return %c0_i32, %c0_i32_0 : i32, i32
  }
  func.func @transform_5(%arg0: i32) -> (i32, i32) {
    %c0_i32 = arith.constant 0 : i32
    %c0_i32_0 = arith.constant 0 : i32
    %c0_i32_1 = arith.constant 0 : i32
    return %c0_i32, %c0_i32_0 : i32, i32
  }
  func.func @transform_6(%arg0: i32) -> (i32, i32) {
    %c0_i32 = arith.constant 0 : i32
    %c0_i32_0 = arith.constant 0 : i32
    return %arg0, %c0_i32 : i32, i32
  }
}

</mosaic_0001>

<bundles_post_ra>
// kernel: tpu_custom_call.1
= control target key start
LH: loop header
LB: loop body
LE: loop exit
PB: predicated region body
PF: predicated region fallthrough
CT: control target
= control target key end

     0   :  { %s1179_s0 = inlined_call_operand.hbm [shape: f32[16,128], index: 0, kind: input, shape index: {}]   ;;  %s1180_s1 = inlined_call_operand.hbm [shape: f32[16,128], index: 1, kind: input, shape index: {}]   ;;  %s1181_s2 = inlined_call_operand.hbm [shape: f32[128,128], index: 2, kind: input, shape index: {}]   ;;  %s1182_s3 = inlined_call_operand.vmem [shape: f32[1,128], index: 3, kind: input, shape index: {}]   ;;  %s1183_s4 = inlined_call_operand.vmem [shape: f32[1,128], index: 4, kind: input, shape index: {}]   ;;  %s1184_s5 = inlined_call_operand.vmem [shape: f32[1,128], index: 5, kind: input, shape index: {}]   ;;  %s1185_s6 = inlined_call_operand.hbm [shape: f32[16,128], index: 6, kind: output, shape index: {}]  }
   0x1   :  { %1191 = sst [smem:[#allocation15_spill]] %s1181_s2 }
   0x2   :  { %11 = vsyncpa [#allocation3], 0 }
   0x3   :  { %13 = vsyncpa [#allocation3 + $0x1], 0 }
   0x4   :  { %14 = vsyncpa [#allocation6], 0 }
   0x5   :  { %16 = vsyncpa [#allocation6 + $0x1], 0 }
   0x6   :  { %17 = vsyncpa [#allocation4], 0 }
   0x7   :  { %19 = vsyncpa [#allocation4 + $0x1], 0  ;;  %s931_s21 = smov 0   ;;  %s933_s22 = smov 0  }
   0x8   :  { %s935_s23 = smov 0   ;;  %s937_s24 = smov 0  }
   0x9 LB: > { %1192 = sst [smem:[#allocation13_spill]] %s881_s23  ;;  %s952_s25 = sadd.s32 4294967295, %s885_s24   ;;  %s885_s24 = sphi %s937_s24, %s1214_s24   ;;  %s881_s23 = sphi %s935_s23, %s1213_s23   ;;  %s877_s22 = sphi %s933_s22, %s1212_s22   ;;  %s873_s21 = sphi %s931_s21, %s1211_s21  }
   0xa   : > { %s558_s26 = sadd.s32 4294967294, %s885_s24   ;;  %p45_p0 = scmp.ne.s32.totalorder %s877_s22, %s873_s21 }
   0xb   : > { %p1186_p1 = scmp.eq.s32.totalorder %s952_s25, 0  ;;  %p185_p3 = scmp.eq.s32.totalorder %s558_s26, 1 }
   0xc   : > { %p559_p5 = scmp.ge.s32.totalorder %s885_s24, 1  ;;  %p192_p7 = scmp.lt.s32.totalorder %s885_s24, 3 }
   0xd   : > { %p961_p4 = por %p1186_p1, %p45_p0  ;;  %p966_p6 = por %p185_p3, %p45_p0 }
   0xe   : > { %p971_p8 = pnand %p559_p5, %p192_p7  ;;  %s887_s30 = smov [#allocation7]  }
   0xf   : > { %s1193_s27 = scalar_select %p961_p4, 1, 0 }
  0x10   : > { %s1194_s28 = scalar_select %p966_p6, 1, 0 }
  0x11   : > { %s1195_s29 = scalar_select %p971_p8, 1, 0 }
  0x12   : > { %s204_s7 = sshll.u32 %s887_s30, 4  ;;  %p664_p9 = pneg %p971_p8  ;;  %s975_s7 = int_to_ptr.vmem [resolvable:$true] %s204_s7 }
  0x13   : > { %s987_s9 = sadd.s32 1, %s885_s24   ;;  %s32_s10 = sadd.s32 1, %s881_s23 }
  0x14   : > { %p982_p11 = pnand %p664_p9, %p1186_p1  ;;  %s29_s11 = ssub.s32 %s885_s24, %s987_s9 }
  0x15   : > { %s1197_s2 = sld [smem:[#allocation15_spill]] }
  0x16   : > { %p725_p13 = pneg %p982_p11 }
  0x1b   : > { %s723_s14 = scalar_lea.hbm %s1197_s2, 2048 }
  0x1c   : > { %p724_p12 = scmp.ne.s32.totalorder %s1197_s2, %s723_s14  ;;  %p730_p5 = scmp.lt.u32.totalorder %s723_s14, %s1197_s2 }
  0x1e   : > { %p726_p0 = pnand %p725_p13, %p724_p12 }
  0x20   : > { %p727_p3 = pneg %p726_p0 }
  0x22   : > { %p732_p7 = pnand %p730_p5, %p727_p3 }
  0x24   : > { %735 = shalt.err (!%p732_p7)
}
  0x25   : > { %s736_s19 = scalar_lea.vmem %s975_s7, 2048  ;;  %p744_p2 = scmp.lt.s32.totalorder %s975_s7, %s975_s7 }
  0x26   : > { %p737_p9 = scmp.ne.s32.totalorder %s975_s7, %s736_s19  ;;  %p745_p6 = scmp.lt.s32.totalorder %s736_s19, %s736_s19 }
  0x28   : > { %p739_p10 = pnand %p737_p9, %p725_p13  ;;  %p746_p4 = por %p745_p6, %p744_p2 }
  0x2a   : > { %p740_p1 = pneg %p739_p10 }
  0x2c   : > { %p747_p8 = pnand %p746_p4, %p740_p1 }
  0x2e   : > { %750 = shalt.err (!%p747_p8)
}
  0x2f   : > { %s888_s20 = smov 128   ;;  %s889_s26 = smov 8  }
  0x30   : > { %667 = dma.hbm_to_vmem [thread:$0]  (!%p982_p11), %s1197_s2, 2048, %s975_s7, [#allocation6], %s888_s20, %s888_s20, %s889_s26  }
  0x31   : > { %p30_p2 = scmp.eq.s32.totalorder %s29_s11, 0  ;;  %p39_p1 = scmp.ne.s32.totalorder %s881_s23, %s877_s22 }
  0x32   : > { %p40_p4 = scmp.eq.s32.totalorder %s885_s24, 0  ;;  %p680_p6 = scmp.lt.s32.totalorder %s885_s24, 2 }
  0x33   : > { %s1018_s13 = scalar_select %p30_p2, %s881_s23, %s32_s10  }
  0x34   : > { %p41_p8 = por %p40_p4, %p39_p1  ;;  %p1199_p10 = scmp.eq.s32.totalorder %s952_s25, 1 }
  0x35   : > { %1198 = sst [smem:[#allocation14_spill]] %s1018_s13  ;;  %s227_s15 = sand.u32 1, %s881_s23  }
  0x36   : > { %p1022_p12 = por %p1199_p10, %p39_p1  ;;  %s563_s16 = sshll.u32 %s885_s24, 7 }
  0x37   : > { %s1028_s17 = sshll.u32 %s227_s15, 3  ;;  %s1033_s7 = scalar_lea.hbm %s1179_s0, %s563_s16 }
  0x38   : > { %s1200_s14 = scalar_select %p1022_p12, 1, 0 }
  0x39   : > { %s231_s10 = scalar_lea.vmem [#allocation2], %s1028_s17  ;;  %p1036_p11 = pnand %p680_p6, %p41_p8 }
  0x3a   : > { %s238_s11 = sshll.u32 %s231_s10, 4  ;;  %s1045_s30 = scalar_lea.hbm %s1180_s1, %s563_s16  ;;  %s1040_s11 = int_to_ptr.vmem [resolvable:$true] %s238_s11 }
  0x3b   : > { %s228_s12 = scalar_lea.sflag [#allocation3], %s227_s15  ;;  %s751_s8 = scalar_lea.hbm %s1033_s7, 128 }
  0x3c   : > { %p752_p13 = scmp.ne.s32.totalorder %s1033_s7, %s751_s8  ;;  %p753_p0 = pneg %p1036_p11 }
  0x3d   : > { %s756_s2 = scalar_lea.hbm %s1179_s0, 256  ;;  %p757_p7 = scmp.lt.u32.totalorder %s1033_s7, %s1179_s0 }
  0x3e   : > { %p754_p3 = pnand %p753_p0, %p752_p13  ;;  %p758_p9 = scmp.lt.u32.totalorder %s756_s2, %s751_s8 }
  0x3f   : > { %p760_p1 = scmp.lt.u32.totalorder %s751_s8, %s1033_s7 }
  0x40   : > { %p755_p5 = pneg %p754_p3  ;;  %p759_p2 = por %p758_p9, %p757_p7 }
  0x42   : > { %p761_p4 = por %p760_p1, %p759_p2 }
  0x44   : > { %p762_p6 = pnand %p761_p4, %p755_p5 }
  0x46   : > { %765 = shalt.err (!%p762_p6)
}
  0x47   : > { %s766_s15 = scalar_lea.vmem %s1040_s11, 128  ;;  %s890_s16 = smov [#allocation2]  }
  0x48   : > { %p767_p8 = scmp.ne.s32.totalorder %s1040_s11, %s766_s15  ;;  %s771_s20 = sshll.u32 %s890_s16, 4  ;;  %s772_s20 = int_to_ptr.vmem [resolvable:$false] %s771_s20 }
  0x49   : > { %s773_s23 = scalar_lea.vmem %s772_s20, 256  ;;  %p774_p3 = scmp.lt.s32.totalorder %s1040_s11, %s772_s20 }
  0x4a   : > { %p769_p10 = pnand %p767_p8, %p753_p0  ;;  %p775_p7 = scmp.lt.s32.totalorder %s773_s23, %s766_s15 }
  0x4c   : > { %p770_p13 = pneg %p769_p10  ;;  %p776_p9 = por %p775_p7, %p774_p3 }
  0x4e   : > { %p777_p2 = pnand %p776_p9, %p770_p13 }
  0x50   : > { %780 = shalt.err (!%p777_p2)
}
  0x51   : > { %671 = dma.hbm_to_vmem [thread:$0]  (!%p1036_p11), %s1033_s7, 128, %s1040_s11, %s228_s12  }
  0x52   : > { %s245_s2 = sand.u32 1, %s885_s24   ;;  %s249_s13 = scalar_lea.vmem [#allocation5], %s1028_s17 }
  0x53   : > { %s256_s26 = sshll.u32 %s249_s13, 4  ;;  %s246_s8 = scalar_lea.sflag [#allocation6], %s245_s2  ;;  %s257_s26 = int_to_ptr.vmem [resolvable:$true] %s256_s26 }
  0x54   : > { %s781_s18 = scalar_lea.hbm %s1045_s30, 128  ;;  %s786_s16 = scalar_lea.hbm %s1180_s1, 256 }
  0x55   : > { %p782_p5 = scmp.ne.s32.totalorder %s1045_s30, %s781_s18  ;;  %p787_p6 = scmp.lt.u32.totalorder %s1045_s30, %s1180_s1 }
  0x56   : > { %p788_p8 = scmp.lt.u32.totalorder %s786_s16, %s781_s18  ;;  %p790_p13 = scmp.lt.u32.totalorder %s781_s18, %s1045_s30 }
  0x57   : > { %p784_p1 = pnand %p782_p5, %p753_p0 }
  0x58   : > { %p789_p10 = por %p788_p8, %p787_p6 }
  0x59   : > { %p785_p4 = pneg %p784_p1 }
  0x5a   : > { %p791_p3 = por %p790_p13, %p789_p10 }
  0x5c   : > { %p792_p7 = pnand %p791_p3, %p785_p4 }
  0x5e   : > { %795 = shalt.err (!%p792_p7)
}
  0x5f   : > { %s796_s17 = scalar_lea.vmem %s257_s26, 128  ;;  %s891_s7 = smov [#allocation5]  }
  0x60   : > { %p797_p9 = scmp.ne.s32.totalorder %s257_s26, %s796_s17  ;;  %s801_s11 = sshll.u32 %s891_s7, 4  ;;  %s802_s11 = int_to_ptr.vmem [resolvable:$false] %s801_s11 }
  0x61   : > { %s803_s12 = scalar_lea.vmem %s802_s11, 256  ;;  %p804_p1 = scmp.lt.s32.totalorder %s257_s26, %s802_s11 }
  0x62   : > { %p799_p2 = pnand %p797_p9, %p753_p0  ;;  %p805_p12 = scmp.lt.s32.totalorder %s803_s12, %s796_s17 }
  0x64   : > { %p800_p5 = pneg %p799_p2  ;;  %p806_p6 = por %p805_p12, %p804_p1 }
  0x66   : > { %p807_p8 = pnand %p806_p6, %p800_p5 }
  0x68   : > { %810 = shalt.err (!%p807_p8)
}
  0x69   : > { %674 = dma.hbm_to_vmem [thread:$0]  (!%p1036_p11), %s1045_s30, 128, %s257_s26, %s246_s8  }
  0x6a   : > { %p1202_p4 = scmp.ne.s32.totalorder %s1195_s29, 0 }
  0x6b   : > { %s1096_s2 = sand.u32 (!%p1202_p4), 1, %s877_s22   ;;  %p1203_p12 = scmp.ne.s32.totalorder (!%p1202_p4), %s1193_s27, 0 }
  0x6c   : > { %265 = sbr.rel (%p1202_p4) target bundleno = 697 (0x2b9), region = 44  ;;  %s1099_s13 = sshll.u32 (!%p1202_p4), %s1096_s2, 3 }
  0x6d   : > { %s268_s18 = scalar_lea.sflag (!%p1202_p4), [#allocation3], %s1096_s2  ;;  %s271_s10 = scalar_lea.vmem (!%p1202_p4), [#allocation2], %s1099_s13 }
  0x73   : > { %856 = dma.done.wait (%p1203_p12), %s268_s18, 128  }
  0x74   : > { %858 = vsyncadd (%p1203_p12), %s268_s18, 4294967168  ;;  %s276_s29 = sand.u32 1, %s952_s25   ;;  %s280_s30 = scalar_lea.vmem [#allocation5], %s1099_s13 }
  0x75   : > { %s277_s19 = scalar_lea.sflag [#allocation6], %s276_s29 }
  0x76   : > { %860 = dma.done.wait (%p1203_p12), %s277_s19, 128  }
  0x77   : > { %862 = vsyncadd (%p1203_p12), %s277_s19, 4294967168  ;;  %p1204_p11 = scmp.eq.s32.totalorder %s952_s25, 0 }
  0x79   : > { %864 = dma.done.wait (%p1204_p11), [#allocation6], 2048   ;;  %p1205_p0 = pmov %p1204_p11 }
  0x7a   : > { %v892_v0 = vmov 0.0|0.0   ;;  %vm893_vm0 = vmmov 0   ;;  %v894_v1 = vmov 0.0   ;;  %v319_v2 = vld [vmem:[#allocation7] sm:$0xff]  ;;  %v320_v3 = vld [vmem:[#allocation7 + $0x8] sm:$0xff]  ;;  %v321_v4 = vld [vmem:[#allocation7 + $0x10] sm:$0xff] }
  0x7b   : > { %866 = vsyncadd (%p1205_p0), [#allocation6], 4294965248  ;;  %630 = vmatprep.subr.bf16.mxu0 %v892_v0  ;;  %627 = vmatprep.mubr.msk.f32.mxu0 %vm893_vm0, %v894_v1  ;;  %v631_v5 = vpack.c.bf16 %v320_v3, %v319_v2  ;;  %v322_v6 = vld [vmem:[#allocation7 + $0x18] sm:$0xff]  ;;  %v323_v8 = vld [vmem:[#allocation7 + $0x20] sm:$0xff]  ;;  %s575_s23 = sshll.u32 %s952_s25, 7  ;;  %s317_s17 = scalar_lea.vmem [#allocation8], %s1099_s13 }
  0x7c   : > { %v634_v7 = vpack.c.bf16 %v322_v6, %v321_v4  ;;  %v324_v9 = vld [vmem:[#allocation7 + $0x28] sm:$0xff]  ;;  %v325_v11 = vld [vmem:[#allocation7 + $0x30] sm:$0xff]  ;;  %v326_v12 = vld [vmem:[#allocation7 + $0x38] sm:$0xff]  ;;  %s456_s7 = sshll.u32 %s317_s17, 4  ;;  %s1135_s18 = scalar_lea.hbm %s1185_s6, %s575_s23  ;;  %s1137_s7 = int_to_ptr.vmem [resolvable:$true] %s456_s7 }
  0x7d   : > { %632 = vmatpush3.bf16.msra.mxu0 %v631_v5  ;;  %v637_v10 = vpack.c.bf16 %v324_v9, %v323_v8  ;;  %v640_v13 = vpack.c.bf16 %v326_v12, %v325_v11  ;;  %v327_v14 = vld [vmem:[#allocation7 + $0x40] sm:$0xff]  ;;  %v328_v15 = vld [vmem:[#allocation7 + $0x48] sm:$0xff]  ;;  %v329_v17 = vld [vmem:[#allocation7 + $0x50] sm:$0xff]  ;;  %s811_s29 = scalar_lea.vmem %s1137_s7, 128  ;;  %p1206_p13 = scmp.ne.s32.totalorder %s1200_s14, 0 }
  0x7e   : > { %633 = vmatprep.subr.bf16.mxu0 %v892_v0  ;;  %v643_v16 = vpack.c.bf16 %v328_v15, %v327_v14  ;;  %v330_v18 = vld [vmem:[#allocation7 + $0x58] sm:$0xff]  ;;  %v331_v20 = vld [vmem:[#allocation7 + $0x60] sm:$0xff]  ;;  %v332_v21 = vld [vmem:[#allocation7 + $0x68] sm:$0xff]  ;;  %p812_p10 = scmp.ne.s32.totalorder %s1137_s7, %s811_s29  ;;  %s895_s25 = smov [#allocation8]  }
  0x7f   : > { %v646_v19 = vpack.c.bf16 %v330_v18, %v329_v17  ;;  %v649_v22 = vpack.c.bf16 %v332_v21, %v331_v20  ;;  %v333_v23 = vld [vmem:[#allocation7 + $0x70] sm:$0xff]  ;;  %v334_v24 = vld [vmem:[#allocation7 + $0x78] sm:$0xff]  ;;  %v318_v26 = vld [vmem:[%s271_s10] sm:$0xff]  ;;  %s443_s10 = scalar_lea.sflag [#allocation4], %s1096_s2  ;;  %s815_s13 = sshll.u32 %s895_s25, 4  ;;  %s816_s13 = int_to_ptr.vmem [resolvable:$false] %s815_s13 }
  0x80   : > { %v652_v25 = vpack.c.bf16 %v334_v24, %v333_v23  ;;  %v571_v27 = vld [vmem:[%s1182_s3] ss:$0 sm:$0xff]  ;;  %v412_v29 = vld [vmem:[%s280_s30] sm:$0xff]  ;;  %p813_p3 = pnand %p812_p10, %p1206_p13  ;;  %s817_s19 = scalar_lea.vmem %s816_s13, 256 }
  0x81   : > { %635 = vmatpush3.bf16.msra.mxu0 %v634_v7  ;;  %v572_v41 = vld [vmem:[%s1183_s4] ss:$0 sm:$0xff]  ;;  %p818_p9 = scmp.lt.s32.totalorder %s1137_s7, %s816_s13  ;;  %p819_p2 = scmp.lt.s32.totalorder %s817_s19, %s811_s29 }
  0x82   : > { %636 = vmatprep.subr.bf16.mxu0 %v892_v0  ;;  %v573_v43 = vld [vmem:[%s1184_s5] ss:$0 sm:$0xff]  ;;  %p814_p7 = pneg %p813_p3 }
  0x83   : > { %p820_p5 = por %p819_p2, %p818_p9 }
  0x85   : > { %638 = vmatpush3.bf16.msra.mxu0 %v637_v10  ;;  %p821_p1 = pnand %p820_p5, %p814_p7 }
  0x86   : > { %639 = vmatprep.subr.bf16.mxu0 %v892_v0 }
  0x89   : > { %641 = vmatpush3.bf16.msra.mxu0 %v640_v13 }
  0x8a   : > { %642 = vmatprep.subr.bf16.mxu0 %v892_v0 }
  0x8d   : > { %644 = vmatpush3.bf16.msra.mxu0 %v643_v16 }
  0x8e   : > { %645 = vmatprep.subr.bf16.mxu0 %v892_v0 }
  0x91   : > { %647 = vmatpush3.bf16.msra.mxu0 %v646_v19 }
  0x92   : > { %648 = vmatprep.subr.bf16.mxu0 %v892_v0 }
  0x95   : > { %650 = vmatpush3.bf16.msra.mxu0 %v649_v22 }
  0x96   : > { %651 = vmatprep.subr.bf16.mxu0 %v892_v0 }
  0x99   : > { %653 = vmatpush3.bf16.msra.mxu0 %v652_v25 }
  0x9c   : > { %628 = vmatmul.mubr.f32.vlgmr.msra.gmra.mrb[0].mxu0 %v318_v26 }
 0x16f   : > { %v408_v28 = vpop.f32.mrb[0].mxu0 }
 0x170   : > { %v409_v30 = vadd.f32 %v571_v27, %v408_v28  ;;  %v629_v31 = vpop.f32.mrb[1].mxu0 }
 0x172   : > { %v413_v32 = vadd.f32 %v412_v29, %v409_v30 }
 0x174   : > { %414 = vadd.xlane.f32.xlu0 %v413_v32 }
 0x201   : > { %v415_v33 = vpop.xlane.xlu0 %414 }
 0x202   : > { %v416_v34 = vmul.f32 0.0078125, %v415_v33 }
 0x204   : > { %v417_v35 = vsub.f32 %v413_v32, %v416_v34 }
 0x206   : > { %v418_v36 = vmul.f32 %v417_v35, %v417_v35 }
 0x208   : > { %419 = vadd.xlane.f32.xlu0 %v418_v36 }
 0x295   : > { %v420_v37 = vpop.xlane.xlu0 %419 }
 0x296   : > { %v421_v38 = vmul.f32 0.0078125, %v420_v37 }
 0x298   : > { %v422_v39 = vadd.f32 1e-12, %v421_v38 }
 0x29a   : > { %721 = vrsqrt.f32 %v422_v39 }
 0x2a4   : > { %v722_v40 = vpop.eup %721 }
 0x2a5   : > { %v424_v42 = vmul.f32 %v722_v40, %v417_v35 }
 0x2a7   : > { %v432_v44 = vmul.f32 %v572_v41, %v424_v42 }
 0x2a9   : > { %v440_v45 = vadd.f32 %v573_v43, %v432_v44 }
 0x2ab   : > { %441 = vst [vmem:[%s317_s17] sm:$0xff] %v440_v45 }
 0x2ac   : > { %824 = shalt.err (!%p821_p1)
}
 0x2ad   : > { %s825_s2 = scalar_lea.hbm %s1135_s18, 128  ;;  %s829_s26 = scalar_lea.hbm %s1185_s6, 256 }
 0x2ae   : > { %p826_p6 = scmp.ne.s32.totalorder %s1135_s18, %s825_s2  ;;  %p830_p12 = scmp.lt.u32.totalorder %s1135_s18, %s1185_s6 }
 0x2af   : > { %p831_p11 = scmp.lt.u32.totalorder %s829_s26, %s825_s2  ;;  %p833_p10 = scmp.lt.u32.totalorder %s825_s2, %s1135_s18 }
 0x2b0   : > { %p827_p8 = pnand %p826_p6, %p1206_p13 }
 0x2b1   : > { %p832_p0 = por %p831_p11, %p830_p12 }
 0x2b2   : > { %p828_p4 = pneg %p827_p8 }
 0x2b3   : > { %p834_p3 = por %p833_p10, %p832_p0 }
 0x2b5   : > { %p835_p7 = pnand %p834_p3, %p828_p4 }
 0x2b7   : > { %838 = shalt.err (!%p835_p7)
}
 0x2b8   : > { %662 = dma.vmem_to_hbm [thread:$0]  (%p1206_p13), %s1137_s7, 128, %s1135_s18, %s443_s10  }
 0x2b9 PF: > { %s468_s16 = sand.u32 1, %s873_s21   ;;  %p1207_p9 = scmp.ne.s32.totalorder %s1194_s28, 0 }
 0x2ba   : > { %p1208_p2 = scmp.ge.s32.totalorder %s885_s24, 2  ;;  %s469_s20 = scalar_lea.sflag [#allocation4], %s468_s16 }
 0x2bc   : > { %p676_p5 = pnand %p1208_p2, %p1207_p9 }
 0x2be   : > { %868 = dma.done.wait (!%p676_p5), %s469_s20, 128  }
 0x2bf   : > { %870 = vsyncadd (!%p676_p5), %s469_s20, 4294967168  ;;  %s1209_s23 = sld [smem:[#allocation13_spill]]  ;;  %s1210_s17 = sld [smem:[#allocation14_spill]] }
 0x2c0   : > { %p22_p1 = scmp.ge.s32.totalorder %s987_s9, 4   ;;  %s1211_s21 = smov %s877_s22 }
 0x2c1   : > { %s1214_s24 = smov %s987_s9 }
 0x2c2   :  { %24 = sbr.rel (!%p22_p1) target bundleno = 9 (0x9), region = 106 }
 0x2c5   : > { %s1212_s22 = smov %s1209_s23  ;;  %s1213_s23 = smov %s1210_s17 }
 0x2c9   :  { %474 = vsyncpa [#allocation3], 1 }
 0x2ca   :  { %476 = vsyncpa [#allocation3 + $0x1], 1 }
 0x2cb   :  { %477 = vsyncpa [#allocation6], 1 }
 0x2cc   :  { %479 = vsyncpa [#allocation6 + $0x1], 1 }
 0x2cd   :  { %480 = vsyncpa [#allocation4], 1 }
 0x2ce   :  { %482 = vsyncpa [#allocation4 + $0x1], 1 }

</bundles_post_ra>
